<compile_context>
chip_gen: v6e
topology: v6e:2x2x1
jax: 0.10.0
libtpu: 0.0.40
codegen_flags: <defaults>
</compile_context>

<pallas_src>
import functools

import jax
import jax.numpy as jnp
from jax.experimental import pallas as pl
from jax.experimental.pallas import tpu as pltpu

_QK = 32          # Q/K channel count (fixed by the module definition)
_EPS_SQ = 1e-24   # eps**2 for F.normalize(eps=1e-12), applied to sum(x*x)


def _round_up(x, m):
  return -(-x // m) * m


def _l2_normalize_cols(a):
  """Per-pixel L2 normalization over the channel (sublane) axis of (32, T)."""
  ss = jnp.sum(a * a, axis=0, keepdims=True)
  # x / max(||x||, eps) == x * rsqrt(max(||x||^2, eps^2)); rsqrt -> EUP slot.
  return a * jax.lax.rsqrt(jnp.maximum(ss, jnp.float32(_EPS_SQ)))


# ---------------------------------------------------------------------------
# Fused single-kernel path (x resident in VMEM, ft + V0 in VMEM scratch).
# ---------------------------------------------------------------------------
def _make_fused_kernel(c, hwp, thw, hw_valid, out_dtype):
  n_tiles = hwp // thw
  need_mask = hw_valid != hwp

  def kernel(x_ref, wk_ref, bk_ref, wq_ref, bq_ref, wv_ref, bv_ref,
             ww_ref, bw_ref, o_ref, ft_ref, v0_ref):
    # x_ref:  (C, HWp) bf16 resident slab for one batch item
    # ft_ref: (C, 32) f32 VMEM scratch; v0_ref: (C, HWp) bf16 VMEM scratch

    def pass1(start):
      xb = x_ref[:, pl.ds(start, thw)]                       # (C, THW) bf16
      k = jnp.dot(wk_ref[...], xb,
                  preferred_element_type=jnp.float32) + bk_ref[...]
      kn = _l2_normalize_cols(k).astype(jnp.bfloat16)        # (32, THW)
      v0 = (jnp.dot(wv_ref[...], xb,
                    preferred_element_type=jnp.float32)
            + bv_ref[...]).astype(jnp.bfloat16)              # pre-relu V0
      v0_ref[:, pl.ds(start, thw)] = v0                      # stash for pass 2
      v = jnp.maximum(v0, 0)                                 # relu(V0) bf16
      if need_mask:
        col = start + jax.lax.broadcasted_iota(jnp.int32, (1, thw), 1)
        v = jnp.where(col < hw_valid, v, jnp.zeros_like(v))  # kill pad lanes
      ft_ref[...] += jax.lax.dot_general(                    # (C, 32) f32 acc
          v, kn, (((1,), (1,)), ((), ())),
          preferred_element_type=jnp.float32)

    def pass2(start):
      xb = x_ref[:, pl.ds(start, thw)]
      q = jnp.dot(wq_ref[...], xb,
                  preferred_element_type=jnp.float32) + bq_ref[...]
      qn = _l2_normalize_cols(q).astype(jnp.bfloat16)        # (32, THW)
      v0 = v0_ref[:, pl.ds(start, thw)].astype(jnp.float32)  # reload, no recompute
      y = jnp.dot(ft_ref[...].astype(jnp.bfloat16), qn,
                  preferred_element_type=jnp.float32)        # (C, THW)
      w = jnp.dot(ww_ref[...], y.astype(jnp.bfloat16),
                  preferred_element_type=jnp.float32) + bw_ref[...]
      o_ref[:, pl.ds(start, thw)] = (jnp.maximum(w, 0.0) + v0).astype(out_dtype)

    ft_ref[...] = jnp.zeros_like(ft_ref)

    if n_tiles == 1:
      pass1(0)
      pass2(0)
    else:
      @pl.loop(0, n_tiles)
      def _(t):
        pass1(pl.multiple_of(t * thw, 128))

      @pl.loop(0, n_tiles)
      def _(t):
        pass2(pl.multiple_of(t * thw, 128))

  return kernel


def _fa_fused(x, p, *, thw, hw_valid, out_dtype, vmem_limit):
  n, c, hwp = x.shape
  kernel = _make_fused_kernel(c, hwp, thw, hw_valid, out_dtype)
  x_spec = pl.BlockSpec((None, c, hwp), lambda i: (i, 0, 0))
  out_spec = pl.BlockSpec((None, c, hwp), lambda i: (i, 0, 0))
  wspec = lambda a: pl.BlockSpec(a.shape, lambda i: (0, 0))
  # NOTE: with N == 1 only one TensorCore is engaged here; on multi-TC parts
  # (v7x) the two-pass path can be forced for tiny batches if that matters.
  return pl.pallas_call(
      kernel,
      out_shape=jax.ShapeDtypeStruct((n, c, hwp), out_dtype),
      grid_spec=pltpu.PrefetchScalarGridSpec(
          num_scalar_prefetch=0,
          grid=(n,),
          in_specs=[x_spec, wspec(p["wk"]), wspec(p["bk"]),
                    wspec(p["wq"]), wspec(p["bq"]),
                    wspec(p["wv"]), wspec(p["bv"]),
                    wspec(p["ww"]), wspec(p["bw"])],
          out_specs=out_spec,
          scratch_shapes=[pltpu.VMEM((c, _QK), jnp.float32),
                          pltpu.VMEM((c, hwp), jnp.bfloat16)]),
      compiler_params=pltpu.CompilerParams(
          dimension_semantics=("parallel",),
          vmem_limit_bytes=vmem_limit),
  )(x, p["wk"], p["bk"], p["wq"], p["bq"], p["wv"], p["bv"], p["ww"], p["bw"])


# ---------------------------------------------------------------------------
# Two-pass streaming path (large per-item working set).
# ---------------------------------------------------------------------------
def _make_ft_kernel(thw, hw_valid, hwp):
  need_mask = hw_valid != hwp

  def kernel(x_ref, wk_ref, bk_ref, wv_ref, bv_ref, ft_ref):
    """Pass 1: accumulate ft = relu(V0) @ l2norm(K)^T over HW tiles."""
    @pl.when(pl.program_id(1) == 0)
    def _():
      ft_ref[...] = jnp.zeros_like(ft_ref)

    xb = x_ref[...]                                          # (C, THW) bf16
    k = jnp.dot(wk_ref[...], xb,
                preferred_element_type=jnp.float32) + bk_ref[...]
    kn = _l2_normalize_cols(k).astype(jnp.bfloat16)
    v = jnp.maximum(
        jnp.dot(wv_ref[...], xb, preferred_element_type=jnp.float32)
        + bv_ref[...], 0.0).astype(jnp.bfloat16)             # relu(V0) bf16
    if need_mask:
      col = (pl.program_id(1) * thw
             + jax.lax.broadcasted_iota(jnp.int32, (1, thw), 1))
      v = jnp.where(col < hw_valid, v, jnp.zeros_like(v))
    ft_ref[...] += jax.lax.dot_general(                      # (C, 32) f32 acc
        v, kn, (((1,), (1,)), ((), ())),
        preferred_element_type=jnp.float32)

  return kernel


def _fa_out_kernel(x_ref, ft_ref, wq_ref, bq_ref, wv_ref, bv_ref,
                   ww_ref, bw_ref, o_ref):
  """Pass 2: out = relu(Ww @ (ft @ l2norm(Q)) + bw) + V0, one HW tile."""
  xb = x_ref[...]                                            # (C, THW) bf16
  q = jnp.dot(wq_ref[...], xb,
              preferred_element_type=jnp.float32) + bq_ref[...]
  qn = _l2_normalize_cols(q).astype(jnp.bfloat16)            # (32, THW)
  v0 = jnp.dot(wv_ref[...], xb,                              # pre-relu V0
               preferred_element_type=jnp.float32) + bv_ref[...]
  y = jnp.dot(ft_ref[...].astype(jnp.bfloat16), qn,
              preferred_element_type=jnp.float32)            # (C, THW)
  w = jnp.dot(ww_ref[...], y.astype(jnp.bfloat16),
              preferred_element_type=jnp.float32) + bw_ref[...]
  o_ref[...] = (jnp.maximum(w, 0.0) + v0).astype(o_ref.dtype)


def _fa_two_pass(x, p, *, thw, hw_valid, out_dtype, vmem_limit):
  n, c, hwp = x.shape
  grid = (n, hwp // thw)

  x_spec = pl.BlockSpec((None, c, thw), lambda i, j: (i, 0, j))
  ft_spec = pl.BlockSpec((None, c, _QK), lambda i, j: (i, 0, 0))
  out_spec = pl.BlockSpec((None, c, thw), lambda i, j: (i, 0, j))
  wspec = lambda a: pl.BlockSpec(a.shape, lambda i, j: (0, 0))
  cparams = lambda sem: pltpu.CompilerParams(
      dimension_semantics=sem, vmem_limit_bytes=vmem_limit)

  # Pass 1: ft[n] accumulated over HW tiles (reduction axis -> "arbitrary").
  ft = pl.pallas_call(
      _make_ft_kernel(thw, hw_valid, hwp),
      out_shape=jax.ShapeDtypeStruct((n, c, _QK), jnp.float32),
      grid_spec=pltpu.PrefetchScalarGridSpec(
          num_scalar_prefetch=0, grid=grid,
          in_specs=[x_spec, wspec(p["wk"]), wspec(p["bk"]),
                    wspec(p["wv"]), wspec(p["bv"])],
          out_specs=ft_spec),
      compiler_params=cparams(("parallel", "arbitrary")),
  )(x, p["wk"], p["bk"], p["wv"], p["bv"])

  # Pass 2: stream HW tiles again; both axes independent (megacore-friendly).
  return pl.pallas_call(
      _fa_out_kernel,
      out_shape=jax.ShapeDtypeStruct((n, c, hwp), out_dtype),
      grid_spec=pltpu.PrefetchScalarGridSpec(
          num_scalar_prefetch=0, grid=grid,
          in_specs=[x_spec, ft_spec, wspec(p["wq"]), wspec(p["bq"]),
                    wspec(p["wv"]), wspec(p["bv"]),
                    wspec(p["ww"]), wspec(p["bw"])],
          out_specs=out_spec),
      compiler_params=cparams(("parallel", "parallel")),
  )(x, ft, p["wq"], p["bq"], p["wv"], p["bv"], p["ww"], p["bw"])


# ---------------------------------------------------------------------------
# Planning (generation-aware tiling, path selection) and wrappers.
# ---------------------------------------------------------------------------
@functools.lru_cache(maxsize=None)
def _vmem_capacity_bytes():
  try:
    return int(pltpu.get_tpu_info().vmem_capacity_bytes)
  except Exception:
    return 64 * 1024 * 1024   # conservative fallback (v7x-sized VMEM)


def _plan(c, hw, out_bytes):
  """Pick HW tile, padded HW, fused-vs-two-pass path, and VMEM limit."""
  cap = _vmem_capacity_bytes()
  vmem_limit = max(32 * 2**20, min(int(cap * 0.875), 120 * 2**20))

  hw128 = _round_up(hw, 128)
  # Generation-aware tile ceiling (1024 on 64 MiB parts, 2048 on 128 MiB)...
  gen_max = 2048 if cap >= 96 * 2**20 else 1024
  # ...capped so double-buffered x/out tiles + f32 temps stay under ~half the
  # scoped-VMEM budget.
  per_col = c * (2 * 2 + 2 * out_bytes) + 4 * (c + 64) * 4
  cap_cols = max(128, ((vmem_limit // 2) // per_col) // 128 * 128)
  max_tile = max(128, min(gen_max, cap_cols))

  if hw128 <= max_tile:
    thw = hw128
  else:
    n_tiles = -(-hw128 // max_tile)
    thw = _round_up(-(-hw128 // n_tiles), 128)   # avoid degenerate 128 tiles
  hwp = _round_up(hw128, thw)

  # Fused single kernel if one (C, HWp) item + scratch comfortably fits VMEM.
  fused_bytes = (2 * c * hwp * 2            # x slab bf16, double-buffered
                 + 2 * c * hwp * out_bytes  # out slab, double-buffered
                 + c * hwp * 2              # V0 scratch (bf16)
                 + 4 * (c + 64) * thw * 4   # per-tile f32 temporaries
                 + 6 * c * c)               # resident bf16 weights
  fused = fused_bytes <= int(vmem_limit * 0.75)
  return thw, hwp, fused, vmem_limit


@functools.partial(jax.jit, static_argnames=("out_dtype", "force_path"))
def fa_forward_nchw(x_nchw, kparams, out_dtype=jnp.float32, force_path=None):
  """x_nchw: (N, C, H, W) f32 -> (N, C, H, W) out_dtype (default f32)."""
  n, c, h, w = x_nchw.shape
  hw = h * w
  out_bytes = jnp.dtype(out_dtype).itemsize
  thw, hwp, fused, vmem_limit = _plan(c, hw, out_bytes)
  if force_path is not None:
    fused = force_path == "fused"

  x = x_nchw.reshape(n, c, hw).astype(jnp.bfloat16)   # half the x HBM bytes
  if hwp != hw:
    x = jnp.pad(x, ((0, 0), (0, 0), (0, hwp - hw)))   # lane-align HW

  fn = _fa_fused if fused else _fa_two_pass
  out = fn(x, kparams, thw=thw, hw_valid=hw, out_dtype=out_dtype,
           vmem_limit=vmem_limit)
  if hwp != hw:
    out = out[:, :, :hw]
  return out.reshape(n, c, h, w)


# ---------------------------------------------------------------------------
# Parameter construction (folded eval-mode conv+BN) and pure-JAX reference.
# ---------------------------------------------------------------------------
def fold_conv_bn(conv_w, conv_b, gamma, beta, mean, var, eps=1e-5):
  """Fold 1x1 conv (C_out, C_in) + inference BN into left-multiply W, b."""
  scale = gamma / jnp.sqrt(var + eps)                 # (C_out,)
  w_eff = conv_w * scale[:, None]                     # (C_out, C_in)
  b_eff = (conv_b - mean) * scale + beta              # (C_out,)
  return w_eff.astype(jnp.float32), b_eff.astype(jnp.float32)


def make_fa_params(key, num_ch):
  """Deterministic synthetic folded (conv+BN, eval-mode) params, f32."""
  def branch(k, c_in, c_out):
    k1, k2, k3, k4, k5, k6 = jax.random.split(k, 6)
    conv_w = jax.random.normal(k1, (c_out, c_in), jnp.float32) * 0.2
    conv_b = jax.random.normal(k2, (c_out,), jnp.float32) * 0.1
    gamma = 1.0 + 0.1 * jax.random.normal(k3, (c_out,), jnp.float32)
    beta = 0.1 * jax.random.normal(k4, (c_out,), jnp.float32)
    mean = 0.1 * jax.random.normal(k5, (c_out,), jnp.float32)
    var = 1.0 + 0.1 * jax.random.uniform(k6, (c_out,), jnp.float32)
    return fold_conv_bn(conv_w, conv_b, gamma, beta, mean, var)

  kq, kk, kv, kw = jax.random.split(key, 4)
  wq, bq = branch(kq, num_ch, _QK)
  wk, bk = branch(kk, num_ch, _QK)
  wv, bv = branch(kv, num_ch, num_ch)
  ww, bw = branch(kw, num_ch, num_ch)
  return dict(wq=wq, bq=bq, wk=wk, bk=bk, wv=wv, bv=bv, ww=ww, bw=bw)


def prepare_kernel_params(p):
  """bf16 weights, f32 column-vector biases for the kernels."""
  as_col = lambda b: b[:, None].astype(jnp.float32)
  return dict(
      wq=p["wq"].astype(jnp.bfloat16), bq=as_col(p["bq"]),
      wk=p["wk"].astype(jnp.bfloat16), bk=as_col(p["bk"]),
      wv=p["wv"].astype(jnp.bfloat16), bv=as_col(p["bv"]),
      ww=p["ww"].astype(jnp.bfloat16), bw=as_col(p["bw"]),
  )


def fa_reference_nchw(x_nchw, p):
  """Pure-JAX f32 reference (folded conv+BN weights, eval-mode BN)."""
  n, c, h, w = x_nchw.shape
  x = x_nchw.reshape(n, c, h * w)
  proj = lambda wt, b: jnp.einsum("oc,nch->noh", wt, x) + b[None, :, None]
  q = proj(p["wq"], p["bq"])
  k = proj(p["wk"], p["bk"])
  v0 = proj(p["wv"], p["bv"])
  eps = 1e-12
  qn = q / jnp.maximum(jnp.sqrt(jnp.sum(q * q, axis=1, keepdims=True)), eps)
  kn = k / jnp.maximum(jnp.sqrt(jnp.sum(k * k, axis=1, keepdims=True)), eps)
  v = jnp.maximum(v0, 0.0)
  f = jnp.einsum("nih,nch->nic", kn, v)          # (N, 32, C)
  y = jnp.einsum("nic,nih->nch", f, qn)          # (N, C, HW)
  out = jnp.einsum("oc,nch->noh", p["ww"], y) + p["bw"][None, :, None]
  out = jnp.maximum(out, 0.0) + v0
  return out.reshape(n, c, h, w)


if __name__ == "__main__":
  key = jax.random.PRNGKey(0)
  kx, kp, kx2, kp2 = jax.random.split(key, 4)

  def check(out, ref, name):
    out = jax.block_until_ready(out)
    assert out.shape == ref.shape, (name, out.shape, ref.shape)
    scale = float(jnp.max(jnp.abs(ref))) + 1.0
    err = float(jnp.max(jnp.abs(out.astype(jnp.float32) - ref)))
    # Loose tolerance: kernel uses bf16 MXU inputs (f32 accumulation).
    assert err / scale < 0.05, f"{name}: max abs error {err} (scale {scale})"

  # Main case: lane-aligned HW (16*16=256) -> fused single-kernel path.
  N, C, H, W = 2, 4, 16, 16
  x = jax.random.normal(kx, (N, C, H, W), jnp.float32)
  folded = make_fa_params(kp, C)
  kparams = prepare_kernel_params(folded)
  ref = fa_reference_nchw(x, folded)
  check(fa_forward_nchw(x, kparams), ref, "fused")
  check(fa_forward_nchw(x, kparams, force_path="two_pass"), ref, "two_pass")

  # Non-multiple-of-128 spatial size: exercises HW padding + pass-1 masking.
  N2, C2, H2, W2 = 1, 8, 13, 13
  x2 = jax.random.normal(kx2, (N2, C2, H2, W2), jnp.float32)
  folded2 = make_fa_params(kp2, C2)
  kparams2 = prepare_kernel_params(folded2)
  ref2 = fa_reference_nchw(x2, folded2)
  check(fa_forward_nchw(x2, kparams2), ref2, "fused_masked")
  check(fa_forward_nchw(x2, kparams2, force_path="two_pass"), ref2,
        "two_pass_masked")

  print("KERNEL_OK")
</pallas_src>

<mosaic_0001>
module attributes {stable_mosaic.version = 11 : i64} {
  func.func @kernel(%arg0: i32, %arg1: memref<1x4x256xbf16, #tpu.memory_space<vmem>>, %arg2: memref<32x4xbf16, #tpu.memory_space<vmem>>, %arg3: memref<32x1xf32, #tpu.memory_space<vmem>>, %arg4: memref<32x4xbf16, #tpu.memory_space<vmem>>, %arg5: memref<32x1xf32, #tpu.memory_space<vmem>>, %arg6: memref<4x4xbf16, #tpu.memory_space<vmem>>, %arg7: memref<4x1xf32, #tpu.memory_space<vmem>>, %arg8: memref<4x4xbf16, #tpu.memory_space<vmem>>, %arg9: memref<4x1xf32, #tpu.memory_space<vmem>>, %arg10: memref<1x4x256xf32, #tpu.memory_space<vmem>>, %arg11: memref<4x32xf32, #tpu.memory_space<vmem>>, %arg12: memref<4x256xbf16, #tpu.memory_space<vmem>>) attributes {dimension_semantics = [#tpu.dimension_semantics<parallel>], iteration_bounds = array<i64: 2>, scalar_prefetch = 0 : i64, scratch_operands = 2 : i64, tpu.core_type = #tpu.core_type<tc>, window_params = [{transform_indices = @transform_0, window_bounds = array<i64: 1, 4, 256>}, {pipeline_mode = #tpu.pipeline_mode<synchronous>, transform_indices = @transform_1, window_bounds = array<i64: 32, 4>}, {pipeline_mode = #tpu.pipeline_mode<synchronous>, transform_indices = @transform_2, window_bounds = array<i64: 32, 1>}, {pipeline_mode = #tpu.pipeline_mode<synchronous>, transform_indices = @transform_3, window_bounds = array<i64: 32, 4>}, {pipeline_mode = #tpu.pipeline_mode<synchronous>, transform_indices = @transform_4, window_bounds = array<i64: 32, 1>}, {pipeline_mode = #tpu.pipeline_mode<synchronous>, transform_indices = @transform_5, window_bounds = array<i64: 4, 4>}, {pipeline_mode = #tpu.pipeline_mode<synchronous>, transform_indices = @transform_6, window_bounds = array<i64: 4, 1>}, {pipeline_mode = #tpu.pipeline_mode<synchronous>, transform_indices = @transform_7, window_bounds = array<i64: 4, 4>}, {pipeline_mode = #tpu.pipeline_mode<synchronous>, transform_indices = @transform_8, window_bounds = array<i64: 4, 1>}, {transform_indices = @transform_9, window_bounds = array<i64: 1, 4, 256>}]} {
    %cst = arith.constant 0.000000e+00 : f32
    %0 = vector.broadcast %cst : f32 to vector<4x32xf32>
    %c0 = arith.constant 0 : index
    %c0_0 = arith.constant 0 : index
    %1 = vector.load %arg11[%c0, %c0_0] : memref<4x32xf32, #tpu.memory_space<vmem>>, vector<4x32xf32>
    tpu.vector_store %arg11[%c0, %c0_0], %0 {strides = array<i32>} : memref<4x32xf32, #tpu.memory_space<vmem>>, vector<4x32xf32>,
    %c0_1 = arith.constant 0 : index
    %c0_2 = arith.constant 0 : index
    %c0_3 = arith.constant 0 : index
    %2 = vector.load %arg1[%c0_1, %c0_2, %c0_3] : memref<1x4x256xbf16, #tpu.memory_space<vmem>>, vector<1x4x256xbf16>
    %3 = vector.shape_cast %2 : vector<1x4x256xbf16> to vector<4x256xbf16>
    %c0_4 = arith.constant 0 : index
    %c0_5 = arith.constant 0 : index
    %4 = vector.load %arg2[%c0_4, %c0_5] : memref<32x4xbf16, #tpu.memory_space<vmem>>, vector<32x4xbf16>
    %cst_6 = arith.constant dense<0.000000e+00> : vector<32x256xf32>
    %5 = tpu.matmul %4, %3, %cst_6 {dimension_numbers = #tpu.dot_dimension_numbers<[1], [0], [0], [1], [0, 0, 1, 1], [], []>} : vector<32x4xbf16>, vector<4x256xbf16>, vector<32x256xf32> -> vector<32x256xf32>
    %c0_7 = arith.constant 0 : index
    %c0_8 = arith.constant 0 : index
    %6 = vector.load %arg3[%c0_7, %c0_8] : memref<32x1xf32, #tpu.memory_space<vmem>>, vector<32x1xf32>
    %7 = vector.broadcast %6 : vector<32x1xf32> to vector<32x256xf32>
    %8 = arith.addf %5, %7 : vector<32x256xf32>
    %9 = arith.mulf %8, %8 : vector<32x256xf32>
    %cst_9 = arith.constant dense<0.000000e+00> : vector<256xf32>
    %10 = vector.multi_reduction <add>, %9, %cst_9 [0] : vector<32x256xf32> to vector<256xf32>
    %11 = vector.shape_cast %10 : vector<256xf32> to vector<1x256xf32>
    %cst_10 = arith.constant 1.000000e-24 : f32
    %12 = vector.broadcast %cst_10 : f32 to vector<1x256xf32>
    %13 = arith.maximumf %11, %12 : vector<1x256xf32>
    %14 = math.rsqrt %13 : vector<1x256xf32>
    %15 = vector.broadcast %14 : vector<1x256xf32> to vector<32x256xf32>
    %16 = arith.mulf %8, %15 : vector<32x256xf32>
    %17 = arith.truncf %16 : vector<32x256xf32> to vector<32x256xbf16>
    %c0_11 = arith.constant 0 : index
    %c0_12 = arith.constant 0 : index
    %18 = vector.load %arg6[%c0_11, %c0_12] : memref<4x4xbf16, #tpu.memory_space<vmem>>, vector<4x4xbf16>
    %cst_13 = arith.constant dense<0.000000e+00> : vector<4x256xf32>
    %19 = tpu.matmul %18, %3, %cst_13 {dimension_numbers = #tpu.dot_dimension_numbers<[1], [0], [0], [1], [0, 0, 1, 1], [], []>} : vector<4x4xbf16>, vector<4x256xbf16>, vector<4x256xf32> -> vector<4x256xf32>
    %c0_14 = arith.constant 0 : index
    %c0_15 = arith.constant 0 : index
    %20 = vector.load %arg7[%c0_14, %c0_15] : memref<4x1xf32, #tpu.memory_space<vmem>>, vector<4x1xf32>
    %21 = vector.broadcast %20 : vector<4x1xf32> to vector<4x256xf32>
    %22 = arith.addf %19, %21 : vector<4x256xf32>
    %23 = arith.truncf %22 : vector<4x256xf32> to vector<4x256xbf16>
    %c0_16 = arith.constant 0 : index
    %c0_17 = arith.constant 0 : index
    %24 = vector.load %arg12[%c0_16, %c0_17] : memref<4x256xbf16, #tpu.memory_space<vmem>>, vector<4x256xbf16>
    tpu.vector_store %arg12[%c0_16, %c0_17], %23 {strides = array<i32>} : memref<4x256xbf16, #tpu.memory_space<vmem>>, vector<4x256xbf16>,
    %cst_18 = arith.constant 0.000000e+00 : bf16
    %25 = vector.broadcast %cst_18 : bf16 to vector<4x256xbf16>
    %26 = arith.maximumf %23, %25 : vector<4x256xbf16>
    %c0_19 = arith.constant 0 : index
    %c0_20 = arith.constant 0 : index
    %27 = vector.load %arg11[%c0_19, %c0_20] : memref<4x32xf32, #tpu.memory_space<vmem>>, vector<4x32xf32>
    %cst_21 = arith.constant dense<0.000000e+00> : vector<4x32xf32>
    %28 = tpu.matmul %26, %17, %cst_21 {dimension_numbers = #tpu.dot_dimension_numbers<[1], [1], [0], [0], [0, 0, 1, 0], [], []>} : vector<4x256xbf16>, vector<32x256xbf16>, vector<4x32xf32> -> vector<4x32xf32>
    %29 = arith.addf %27, %28 : vector<4x32xf32>
    %c0_22 = arith.constant 0 : index
    %c0_23 = arith.constant 0 : index
    %30 = vector.load %arg11[%c0_22, %c0_23] : memref<4x32xf32, #tpu.memory_space<vmem>>, vector<4x32xf32>
    tpu.vector_store %arg11[%c0_22, %c0_23], %29 {strides = array<i32>} : memref<4x32xf32, #tpu.memory_space<vmem>>, vector<4x32xf32>,
    %c0_24 = arith.constant 0 : index
    %c0_25 = arith.constant 0 : index
    %c0_26 = arith.constant 0 : index
    %31 = vector.load %arg1[%c0_24, %c0_25, %c0_26] : memref<1x4x256xbf16, #tpu.memory_space<vmem>>, vector<1x4x256xbf16>
    %32 = vector.shape_cast %31 : vector<1x4x256xbf16> to vector<4x256xbf16>
    %c0_27 = arith.constant 0 : index
    %c0_28 = arith.constant 0 : index
    %33 = vector.load %arg4[%c0_27, %c0_28] : memref<32x4xbf16, #tpu.memory_space<vmem>>, vector<32x4xbf16>
    %cst_29 = arith.constant dense<0.000000e+00> : vector<32x256xf32>
    %34 = tpu.matmul %33, %32, %cst_29 {dimension_numbers = #tpu.dot_dimension_numbers<[1], [0], [0], [1], [0, 0, 1, 1], [], []>} : vector<32x4xbf16>, vector<4x256xbf16>, vector<32x256xf32> -> vector<32x256xf32>
    %c0_30 = arith.constant 0 : index
    %c0_31 = arith.constant 0 : index
    %35 = vector.load %arg5[%c0_30, %c0_31] : memref<32x1xf32, #tpu.memory_space<vmem>>, vector<32x1xf32>
    %36 = vector.broadcast %35 : vector<32x1xf32> to vector<32x256xf32>
    %37 = arith.addf %34, %36 : vector<32x256xf32>
    %38 = arith.mulf %37, %37 : vector<32x256xf32>
    %cst_32 = arith.constant dense<0.000000e+00> : vector<256xf32>
    %39 = vector.multi_reduction <add>, %38, %cst_32 [0] : vector<32x256xf32> to vector<256xf32>
    %40 = vector.shape_cast %39 : vector<256xf32> to vector<1x256xf32>
    %cst_33 = arith.constant 1.000000e-24 : f32
    %41 = vector.broadcast %cst_33 : f32 to vector<1x256xf32>
    %42 = arith.maximumf %40, %41 : vector<1x256xf32>
    %43 = math.rsqrt %42 : vector<1x256xf32>
    %44 = vector.broadcast %43 : vector<1x256xf32> to vector<32x256xf32>
    %45 = arith.mulf %37, %44 : vector<32x256xf32>
    %46 = arith.truncf %45 : vector<32x256xf32> to vector<32x256xbf16>
    %c0_34 = arith.constant 0 : index
    %c0_35 = arith.constant 0 : index
    %47 = vector.load %arg12[%c0_34, %c0_35] : memref<4x256xbf16, #tpu.memory_space<vmem>>, vector<4x256xbf16>
    %48 = arith.extf %47 : vector<4x256xbf16> to vector<4x256xf32>
    %c0_36 = arith.constant 0 : index
    %c0_37 = arith.constant 0 : index
    %49 = vector.load %arg11[%c0_36, %c0_37] : memref<4x32xf32, #tpu.memory_space<vmem>>, vector<4x32xf32>
    %50 = arith.truncf %49 : vector<4x32xf32> to vector<4x32xbf16>
    %cst_38 = arith.constant dense<0.000000e+00> : vector<4x256xf32>
    %51 = tpu.matmul %50, %46, %cst_38 {dimension_numbers = #tpu.dot_dimension_numbers<[1], [0], [0], [1], [0, 0, 1, 1], [], []>} : vector<4x32xbf16>, vector<32x256xbf16>, vector<4x256xf32> -> vector<4x256xf32>
    %c0_39 = arith.constant 0 : index
    %c0_40 = arith.constant 0 : index
    %52 = vector.load %arg8[%c0_39, %c0_40] : memref<4x4xbf16, #tpu.memory_space<vmem>>, vector<4x4xbf16>
    %53 = arith.truncf %51 : vector<4x256xf32> to vector<4x256xbf16>
    %cst_41 = arith.constant dense<0.000000e+00> : vector<4x256xf32>
    %54 = tpu.matmul %52, %53, %cst_41 {dimension_numbers = #tpu.dot_dimension_numbers<[1], [0], [0], [1], [0, 0, 1, 1], [], []>} : vector<4x4xbf16>, vector<4x256xbf16>, vector<4x256xf32> -> vector<4x256xf32>
    %c0_42 = arith.constant 0 : index
    %c0_43 = arith.constant 0 : index
    %55 = vector.load %arg9[%c0_42, %c0_43] : memref<4x1xf32, #tpu.memory_space<vmem>>, vector<4x1xf32>
    %56 = vector.broadcast %55 : vector<4x1xf32> to vector<4x256xf32>
    %57 = arith.addf %54, %56 : vector<4x256xf32>
    %cst_44 = arith.constant 0.000000e+00 : f32
    %58 = vector.broadcast %cst_44 : f32 to vector<4x256xf32>
    %59 = arith.maximumf %57, %58 : vector<4x256xf32>
    %60 = arith.addf %59, %48 : vector<4x256xf32>
    %c0_45 = arith.constant 0 : index
    %c0_46 = arith.constant 0 : index
    %c0_47 = arith.constant 0 : index
    %61 = vector.load %arg10[%c0_45, %c0_46, %c0_47] : memref<1x4x256xf32, #tpu.memory_space<vmem>>, vector<1x4x256xf32>
    %62 = vector.shape_cast %61 : vector<1x4x256xf32> to vector<4x256xf32>
    %63 = vector.shape_cast %60 : vector<4x256xf32> to vector<1x4x256xf32>
    tpu.vector_store %arg10[%c0_45, %c0_46, %c0_47], %63 {strides = array<i32>} : memref<1x4x256xf32, #tpu.memory_space<vmem>>, vector<1x4x256xf32>,
    return
  }
  func.func @transform_0(%arg0: i32) -> (i32, i32, i32) {
    %c0_i32 = arith.constant 0 : i32
    %c0_i32_0 = arith.constant 0 : i32
    %c0_i32_1 = arith.constant 0 : i32
    return %arg0, %c0_i32, %c0_i32_0 : i32, i32, i32
  }
  func.func @transform_1(%arg0: i32) -> (i32, i32) {
    %c0_i32 = arith.constant 0 : i32
    %c0_i32_0 = arith.constant 0 : i32
    %c0_i32_1 = arith.constant 0 : i32
    return %c0_i32, %c0_i32_0 : i32, i32
  }
  func.func @transform_2(%arg0: i32) -> (i32, i32) {
    %c0_i32 = arith.constant 0 : i32
    %c0_i32_0 = arith.constant 0 : i32
    %c0_i32_1 = arith.constant 0 : i32
    return %c0_i32, %c0_i32_0 : i32, i32
  }
  func.func @transform_3(%arg0: i32) -> (i32, i32) {
    %c0_i32 = arith.constant 0 : i32
    %c0_i32_0 = arith.constant 0 : i32
    %c0_i32_1 = arith.constant 0 : i32
    return %c0_i32, %c0_i32_0 : i32, i32
  }
  func.func @transform_4(%arg0: i32) -> (i32, i32) {
    %c0_i32 = arith.constant 0 : i32
    %c0_i32_0 = arith.constant 0 : i32
    %c0_i32_1 = arith.constant 0 : i32
    return %c0_i32, %c0_i32_0 : i32, i32
  }
  func.func @transform_5(%arg0: i32) -> (i32, i32) {
    %c0_i32 = arith.constant 0 : i32
    %c0_i32_0 = arith.constant 0 : i32
    %c0_i32_1 = arith.constant 0 : i32
    return %c0_i32, %c0_i32_0 : i32, i32
  }
  func.func @transform_6(%arg0: i32) -> (i32, i32) {
    %c0_i32 = arith.constant 0 : i32
    %c0_i32_0 = arith.constant 0 : i32
    %c0_i32_1 = arith.constant 0 : i32
    return %c0_i32, %c0_i32_0 : i32, i32
  }
  func.func @transform_7(%arg0: i32) -> (i32, i32) {
    %c0_i32 = arith.constant 0 : i32
    %c0_i32_0 = arith.constant 0 : i32
    %c0_i32_1 = arith.constant 0 : i32
    return %c0_i32, %c0_i32_0 : i32, i32
  }
  func.func @transform_8(%arg0: i32) -> (i32, i32) {
    %c0_i32 = arith.constant 0 : i32
    %c0_i32_0 = arith.constant 0 : i32
    %c0_i32_1 = arith.constant 0 : i32
    return %c0_i32, %c0_i32_0 : i32, i32
  }
  func.func @transform_9(%arg0: i32) -> (i32, i32, i32) {
    %c0_i32 = arith.constant 0 : i32
    %c0_i32_0 = arith.constant 0 : i32
    %c0_i32_1 = arith.constant 0 : i32
    return %arg0, %c0_i32, %c0_i32_0 : i32, i32, i32
  }
}

</mosaic_0001>

<bundles_post_ra>
// kernel: fa_forward_nchw.1
= control target key start
LH: loop header
LB: loop body
LE: loop exit
PB: predicated region body
PF: predicated region fallthrough
CT: control target
= control target key end

     0   :  { %s1049_s30 = smov 0   ;;  %s1223_s0 = inlined_call_operand.vmem [shape: bf16[2,4,256], index: 0, kind: input, shape index: {}]   ;;  %s1224_s1 = inlined_call_operand.vmem [shape: bf16[32,4], index: 1, kind: input, shape index: {}]   ;;  %s1225_s2 = inlined_call_operand.vmem [shape: f32[32,1], index: 2, kind: input, shape index: {}]   ;;  %s1226_s3 = inlined_call_operand.vmem [shape: bf16[32,4], index: 3, kind: input, shape index: {}]   ;;  %s1227_s4 = inlined_call_operand.vmem [shape: f32[32,1], index: 4, kind: input, shape index: {}]   ;;  %s1228_s5 = inlined_call_operand.vmem [shape: bf16[4,4], index: 5, kind: input, shape index: {}]   ;;  %s1229_s6 = inlined_call_operand.vmem [shape: f32[4,1], index: 6, kind: input, shape index: {}]   ;;  %s1230_s7 = inlined_call_operand.vmem [shape: bf16[4,4], index: 7, kind: input, shape index: {}]   ;;  %s1231_s8 = inlined_call_operand.vmem [shape: f32[4,1], index: 8, kind: input, shape index: {}]   ;;  %s1232_s9 = inlined_call_operand.vmem [shape: f32[2,4,256], index: 9, kind: output, shape index: {}]  }
   0x1 LB: > { %s933_s10 = sadd.s32 4294967295, %s995_s30   ;;  %p937_p0 = scmp.ge.s32.totalorder %s995_s30, 1  ;;  %s995_s30 = sphi %s1049_s30, %s19_s30  }
   0x2   : > { %p287_p1 = scmp.lt.s32.totalorder %s995_s30, 3 }
   0x4   : > { %p288_p2 = pnand %p937_p0, %p287_p1 }
   0x5   : > { %p323_p3 = scmp.lt.s32.totalorder (!%p288_p2), %s933_s10, 1 }
   0x6   : > { %291 = sbr.rel (%p288_p2) target bundleno = 892 (0x37c), region = 56 }
   0xb   : > { %v997_v0 = vmov 0   ;;  %s1234_s10 = smov (!%p323_p3, %s933_s10), 1  ;;  %vm391_vm0 = vcmask 1041408   ;;  %v341_v1 = vld [vmem:[%s1225_s2] sm:$0xff]  ;;  %v343_v2 = vld [vmem:[%s1225_s2 + $0x10] sm:$0xff]  ;;  %v342_v6 = vld [vmem:[%s1225_s2 + $0x8] sm:$0xff] }
   0xc   : > { %430 = vmatprep.mubr.bf16.mxu0 %v997_v0  ;;  %535 = vmatprep.mubr.bf16.mxu1 %v997_v0  ;;  %s963_s11 = sshll.u32 %s1234_s10, 2  ;;  %v977_v7 = vld [vmem:[%s1224_s1] sm:$0xff]   ;;  %v344_v8 = vld [vmem:[%s1225_s2 + $0x18] sm:$0xff]  ;;  %vm384_vm1 = vcmask 31744   ;;  %v609_v12 = vld [vmem:[%s1227_s4 + $0x8] sm:$0xff]  ;;  %vm334_vm2 = vcmask 257024  }
   0xd   : > { %975 = vset.pattern.permute.xlu0 %v997_v0  ;;  %976 = vset.pattern.permute.xlu1 %v997_v0  ;;  %s327_s16 = scalar_lea.vmem %s1223_s0, %s963_s11  ;;  %v493_v9 = vld [vmem:[%s1228_s5] sm:$0x3]  ;;  %v978_v13 = vld [vmem:[%s1224_s1 + $0x8] sm:$0xff]   ;;  %v610_v15 = vld [vmem:[%s1227_s4 + $0x10] sm:$0xff]  ;;  %v998_v19 = vmov 0.0   ;;  %vm762_vm3 = vcmask 261120  }
   0xe   : > { %347 = vperm.xlu0 %975, %v341_v1   ;;  %v944_v3 = vld.sshfl [vmem:[%s327_s16] sm:$0x33 pattern:$0x76325410]  ;;  %357 = vperm.xlu1 %976, %v343_v2   ;;  %v611_v16 = vld [vmem:[%s1227_s4 + $0x18] sm:$0xff]  ;;  %v980_v18 = vld [vmem:[%s1226_s3 + $0x8] sm:$0xff]  }
   0xf   : > { %v383_v4 = vcombine.high %v944_v3, %v944_v3  ;;  %v393_v5 = vsel %vm391_vm0, %v944_v3, 0  ;;  %v494_v10 = vld [vmem:[%s1229_s6] sm:$0xf]  ;;  %335 = vst.msk [vmem:[#allocation2] sm:$0xf] %vm334_vm2, %v998_v19  ;;  %s964_s28 = sshll.u32 %s1234_s10, 3 }
  0x10   : > { %v608_v11 = vld [vmem:[%s1227_s4] sm:$0xff]  ;;  %s332_s12 = scalar_lea.vmem %s1232_s9, %s964_s28 }
  0x11   : > { %945 = vmatprep.subr.msk.bf16.mxu0 %vm391_vm0, %v383_v4  ;;  %948 = vmatprep.subr.msk.bf16.mxu1 %vm391_vm0, %v383_v4  ;;  %v979_v14 = vld [vmem:[%s1226_s3] sm:$0xff]  }
  0x12   : > { %413 = vmatpush1.bf16.msra.mxu0 %v393_v5  ;;  %518 = vmatpush1.bf16.msra.mxu1 %v393_v5  ;;  %v810_v17 = vld [vmem:[%s1231_s8] sm:$0xf] }
  0x13   : > { %955 = vmatprep.subr.msk.bf16.mxu1 %vm391_vm0, %v383_v4  ;;  %352 = vperm.xlu0 %975, %v342_v6  }
  0x14   : > { %362 = vperm.xlu1 %976, %v344_v8  }
  0x15   : > { %946 = vmatmul.mubr.msk.bf16.vlgmr.msra.gmra.mxu0 %vm384_vm1, %v977_v7  ;;  %949 = vmatmul.mubr.msk.bf16.vlgmr.msra.gmra.mxu1 %vm384_vm1, %v493_v9 }
  0x16   : > { %678 = vmatpush1.bf16.msra.mxu1 %v393_v5  ;;  %440 = vmatprep.mubr.bf16.mxu0 %v997_v0 }
  0x17   : > { %695 = vmatprep.mubr.bf16.mxu1 %v997_v0  ;;  %497 = vperm.xlu0 %975, %v494_v10  }
  0x18   : > { %614 = vperm.xlu1 %976, %v608_v11  }
  0x1b   : > { %619 = vperm.xlu0 %975, %v609_v12  }
  0x1c   : > { %624 = vperm.xlu1 %976, %v610_v15  }
  0x1d   : > { %947 = vmatmul.mubr.msk.bf16.gmra.mxu0 %vm384_vm1, %v978_v13  ;;  %956 = vmatmul.mubr.msk.bf16.vlgmr.msra.gmra.mxu1 %vm384_vm1, %v979_v14 }
  0x1e   : > { %705 = vmatprep.mubr.bf16.mxu1 %v997_v0 }
  0x1f   : > { %629 = vperm.xlu0 %975, %v611_v16  }
  0x20   : > { %813 = vperm.xlu1 %976, %v810_v17  }
  0x25   : > { %957 = vmatmul.mubr.msk.bf16.gmra.mxu1 %vm384_vm1, %v980_v18 }
  0x26   : > { %857 = vmatprep.mubr.bf16.mxu1 %v997_v0 }
  0x89   : > { %v348_v20 = vpop.permute.xlu0 %347  ;;  %v358_v22 = vpop.permute.xlu1 %357 }
  0x8e   : > { %v353_v21 = vpop.permute.xlu0 %352 }
  0x8f   : > { %v363_v29 = vpop.permute.xlu1 %362 }
  0x92   : > { %v498_v23 = vpop.permute.xlu0 %497 }
  0x93   : > { %v615_v43 = vpop.permute.xlu1 %614 }
  0x96   : > { %v620_v55 = vpop.permute.xlu0 %619 }
  0x97   : > { %v625_v4 = vpop.permute.xlu1 %624 }
  0xd5   : > { %v432_v24 = vpop.f32.mrf.mxu0  ;;  %v537_v25 = vpop.f32.mrf.mxu1 }
  0xd6   : > { %v1126_v26 = vadd.f32 %v537_v25, %v498_v23  ;;  %v1131_v38 = vadd.f32 %v432_v24, %v348_v20 }
  0xd7   : > { %v434_v27 = vpop.f32.mrf.mxu0  ;;  %v539_v28 = vpop.f32.mrf.mxu1 }
  0xd8   : > { %v540_v30 = vadd.f32 %v539_v28, %v498_v23  ;;  %v1136_v44 = vadd.f32 %v434_v27, %v348_v20  ;;  %v451_v49 = vmul.f32 %v1131_v38, %v1131_v38 }
  0xd9   : > { %v436_v31 = vpop.f32.mrf.mxu0  ;;  %v541_v32 = vpop.f32.mrf.mxu1 }
  0xda   : > { %v545_v33 = vpack.c.bf16 %v540_v30, %v540_v30  ;;  %v950_v34 = vpack.c.bf16 %v540_v30, %v1126_v26  ;;  %v1129_v35 = vadd.f32 %v436_v31, %v353_v21  ;;  %v452_v56 = vmul.f32 %v1136_v44, %v1136_v44 }
  0xdb   : > { %v438_v36 = vpop.f32.mrf.mxu0  ;;  %v542_v37 = vpop.f32.mrf.mxu1 }
  0xdc   : > { %951 = vst.sshfl [vmem:[#allocation3] sm:$0x33 pattern:$0x76325410] %v950_v34  ;;  %v1133_v39 = vadd.f32 %v438_v36, %v353_v21  ;;  %v559_v40 = vmax.bf16 %v997_v0, %v545_v33  ;;  %v453_v45 = vmul.f32 %v1129_v35, %v1129_v35 }
  0xdd   : > { %v442_v41 = vpop.f32.mrf.mxu0  ;;  %v697_v42 = vpop.f32.mrf.mxu1 }
  0xde   : > { %v1140_v46 = vadd.f32 %v442_v41, %v358_v22  ;;  %593 = vmatprep.mubr.bf16.mxu0 %v559_v40  ;;  %v454_v50 = vmul.f32 %v1133_v39, %v1133_v39  ;;  %v459_v57 = vadd.f32 %v453_v45, %v451_v49  ;;  %v1162_v5 = vadd.f32 %v697_v42, %v615_v43 }
  0xdf   : > { %v444_v47 = vpop.f32.mrf.mxu0  ;;  %v699_v48 = vpop.f32.mrf.mxu1 }
  0xe0   : > { %v455_v51 = vmul.f32 %v1140_v46, %v1140_v46  ;;  %v1148_v52 = vadd.f32 %v444_v47, %v358_v22  ;;  %v468_v63 = vadd.f32 %v454_v50, %v452_v56  ;;  %v1164_v6 = vadd.f32 %v699_v48, %v615_v43  ;;  %v630_v22 = vpop.permute.xlu0 %629 }
  0xe1   : > { %v446_v53 = vpop.f32.mrf.mxu0  ;;  %v701_v54 = vpop.f32.mrf.mxu1  ;;  %v716_v19 = vmul.f32 %v1162_v5, %v1162_v5 }
  0xe2   : > { %v456_v58 = vmul.f32 %v1148_v52, %v1148_v52  ;;  %v1154_v59 = vadd.f32 %v446_v53, %v363_v29  ;;  %v1156_v60 = vadd.f32 %v701_v54, %v620_v55  ;;  %v460_v1 = vadd.f32 %v459_v57, %v455_v51 }
  0xe3   : > { %v448_v61 = vpop.f32.mrf.mxu0  ;;  %v703_v62 = vpop.f32.mrf.mxu1  ;;  %v717_v23 = vmul.f32 %v1164_v6, %v1164_v6 }
  0xe4   : > { %v457_v2 = vmul.f32 %v1154_v59, %v1154_v59  ;;  %v1160_v3 = vadd.f32 %v448_v61, %v363_v29  ;;  %v1166_v7 = vadd.f32 %v703_v62, %v620_v55  ;;  %v469_v9 = vadd.f32 %v468_v63, %v456_v58 }
  0xe5   : > { %v707_v8 = vpop.f32.mrf.mxu1  ;;  %v718_v13 = vmul.f32 %v1156_v60, %v1156_v60 }
  0xe6   : > { %v461_v10 = vadd.f32 %v460_v1, %v457_v2  ;;  %v458_v11 = vmul.f32 %v1160_v3, %v1160_v3  ;;  %v1170_v12 = vadd.f32 %v707_v8, %v625_v4  ;;  %v719_v17 = vmul.f32 %v1166_v7, %v1166_v7 }
  0xe7   : > { %v709_v14 = vpop.f32.mrf.mxu1  ;;  %v724_v28 = vadd.f32 %v718_v13, %v716_v19 }
  0xe8   : > { %v462_v15 = vrot.slane %v461_v10, 4  ;;  %v470_v16 = vadd.f32 %v469_v9, %v458_v11  ;;  %v1176_v18 = vadd.f32 %v709_v14, %v625_v4  ;;  %v720_v20 = vmul.f32 %v1170_v12, %v1170_v12 }
  0xe9   : > { %v711_v21 = vpop.f32.mrf.mxu1  ;;  %v733_v33 = vadd.f32 %v719_v17, %v717_v23 }
  0xea   : > { %v463_v24 = vadd.f32 %v462_v15, %v461_v10  ;;  %v471_v25 = vrot.slane %v470_v16, 4  ;;  %v721_v27 = vmul.f32 %v1176_v18, %v1176_v18  ;;  %v1186_v29 = vadd.f32 %v711_v21, %v630_v22 }
  0xeb   : > { %v713_v30 = vpop.f32.mrf.mxu1  ;;  %v725_v36 = vadd.f32 %v724_v28, %v720_v20 }
  0xec   : > { %v464_v31 = vrot.slane %v463_v24, 2  ;;  %v472_v32 = vadd.f32 %v471_v25, %v470_v16  ;;  %v714_v34 = vadd.f32 %v713_v30, %v630_v22  ;;  %v722_v37 = vmul.f32 %v1186_v29, %v1186_v29 }
  0xed   : > { %v734_v42 = vadd.f32 %v733_v33, %v721_v27 }
  0xee   : > { %v465_v40 = vadd.f32 %v464_v31, %v463_v24  ;;  %v473_v41 = vrot.slane %v472_v32, 2  ;;  %v723_v43 = vmul.f32 %v714_v34, %v714_v34  ;;  %v726_v45 = vadd.f32 %v725_v36, %v722_v37 }
  0xf0   : > { %v466_v47 = vrot.slane %v465_v40, 1  ;;  %v474_v48 = vadd.f32 %v473_v41, %v472_v32  ;;  %v735_v49 = vadd.f32 %v734_v42, %v723_v43  ;;  %v727_v50 = vrot.slane %v726_v45, 4 }
  0xf2   : > { %v467_v51 = vadd.f32 %v466_v47, %v465_v40  ;;  %v475_v53 = vrot.slane %v474_v48, 1  ;;  %v736_v54 = vrot.slane %v735_v49, 4  ;;  %v728_v55 = vadd.f32 %v727_v50, %v726_v45  ;;  %v807_v50 = vld [vmem:[%s1230_s7] sm:$0x3] }
  0xf4   : > { %v477_v56 = vmax.f32 %v467_v51, 1e-24  ;;  %v476_v57 = vadd.f32 %v475_v53, %v474_v48  ;;  %v737_v58 = vadd.f32 %v736_v54, %v735_v49  ;;  %v729_v61 = vrot.slane %v728_v55, 2  ;;  %v758_v51 = vld [vmem:[#allocation3] sm:$0xf]  ;;  %v814_v53 = vpop.permute.xlu1 %813 }
  0xf6   : > { %981 = vrsqrt.f32 %v477_v56  ;;  %v478_v62 = vmax.f32 %v476_v57, 1e-24  ;;  %v738_v63 = vrot.slane %v737_v58, 2  ;;  %v730_v1 = vadd.f32 %v729_v61, %v728_v55 }
  0xf7   : > { %v759_v55 = vunpack.c.l.bf16 %v758_v51 }
  0xf8   : > { %983 = vrsqrt.f32 %v478_v62  ;;  %v739_v2 = vadd.f32 %v738_v63, %v737_v58  ;;  %v731_v4 = vrot.slane %v730_v1, 1 }
  0xfa   : > { %v740_v8 = vrot.slane %v739_v2, 1  ;;  %v732_v10 = vadd.f32 %v731_v4, %v730_v1  ;;  %v869_v1 = vcombine.high %v759_v55, %v759_v55 }
  0xfc   : > { %v741_v9 = vadd.f32 %v740_v8, %v739_v2  ;;  %v742_v13 = vmax.f32 %v732_v10, 1e-24 }
  0xfe   : > { %v743_v11 = vmax.f32 %v741_v9, 1e-24 }
 0x100   : > { %985 = vrsqrt.f32 %v743_v11 }
 0x101   : > { %987 = vrsqrt.f32 %v742_v13 }
 0x103   : > { %v982_v14 = vpop.eup %981 }
 0x104   : > { %v485_v16 = vmul.f32 %v982_v14, %v1140_v46  ;;  %v487_v17 = vmul.f32 %v982_v14, %v1154_v59  ;;  %v481_v46 = vmul.f32 %v982_v14, %v1131_v38  ;;  %v483_v59 = vmul.f32 %v982_v14, %v1129_v35 }
 0x105   : > { %v984_v15 = vpop.eup %983 }
 0x106   : > { %v488_v19 = vmul.f32 %v984_v15, %v1160_v3  ;;  %v486_v20 = vmul.f32 %v984_v15, %v1148_v52  ;;  %v482_v21 = vmul.f32 %v984_v15, %v1136_v44  ;;  %v484_v22 = vmul.f32 %v984_v15, %v1133_v39 }
 0x107   : > { %v491_v24 = vpack.c.bf16 %v487_v17, %v485_v16  ;;  %v489_v30 = vpack.c.bf16 %v483_v59, %v481_v46  ;;  %v544_v39 = vpack.c.bf16 %v1126_v26, %v1126_v26 }
 0x108   : > { %v492_v23 = vpack.c.bf16 %v488_v19, %v486_v20  ;;  %v490_v25 = vpack.c.bf16 %v484_v22, %v482_v21 }
 0x109   : > { %v558_v35 = vmax.bf16 %v997_v0, %v544_v39 }
 0x10a   : > { %573 = vmatprep.subr.bf16.mxu0 %v492_v23 }
 0x10b   : > { %574 = vmatpush1.bf16.xpose.msra.mxu0 %v491_v24 }
 0x10c   : > { %575 = vmatprep.subr.bf16.mxu0 %v490_v25 }
 0x10d   : > { %v986_v27 = vpop.eup %985 }
 0x10e   : > { %v753_v28 = vmul.f32 %v986_v27, %v714_v34  ;;  %v751_v3 = vmul.f32 %v986_v27, %v1176_v18  ;;  %v988_v52 = vpop.eup %987  ;;  %v747_v33 = vmul.f32 %v986_v27, %v1164_v6  ;;  %v749_v38 = vmul.f32 %v986_v27, %v1166_v7 }
 0x10f   : > { %v750_v44 = vmul.f32 %v988_v52, %v1170_v12  ;;  %v752_v32 = vmul.f32 %v988_v52, %v1186_v29  ;;  %v746_v18 = vmul.f32 %v988_v52, %v1162_v5  ;;  %v748_v36 = vmul.f32 %v988_v52, %v1156_v60  ;;  %v560_v12 = vld [vmem:[#allocation2] sm:$0xf] }
 0x110   : > { %v757_v31 = vpack.c.bf16 %v753_v28, %v751_v3  ;;  %v755_v37 = vpack.c.bf16 %v749_v38, %v747_v33 }
 0x111   : > { %v756_v34 = vpack.c.bf16 %v752_v32, %v750_v44  ;;  %v754_v26 = vpack.c.bf16 %v748_v36, %v746_v18 }
 0x113   : > { %576 = vmatpush1.bf16.xpose.msra.mxu0 %v489_v30 }
 0x114   : > { %778 = vmatprep.subr.bf16.mxu0 %v757_v31 }
 0x11a   : > { %594 = vmatmul.mubr.bf16.vlgmr.msra.gmra.mxu0 %v558_v35 }
 0x11b   : > { %779 = vmatpush1.bf16.msra.mxu0 %v756_v34  ;;  %798 = vmatprep.mubr.bf16.mxu0 %v997_v0 }
 0x11c   : > { %780 = vmatprep.subr.bf16.mxu0 %v755_v37 }
 0x11f   : > { %781 = vmatpush1.bf16.msra.mxu0 %v754_v26 }
 0x1da   : > { %v595_v29 = vpop.f32.mrf.mxu0 }
 0x1db   : > { %v601_v6 = vadd.f32 %v595_v29, %v560_v12 }
 0x1dc   : > { %v597_v40 = vpop.f32.mrf.mxu0 }
 0x1dd   : > { %602 = vst.msk [vmem:[#allocation2] sm:$0xf] %vm334_vm2, %v601_v6 }
 0x1de   : > { %v598_v7 = vpop.f32.mrf.mxu0 }
 0x1e0   : > { %v599_v41 = vpop.f32.mrf.mxu0 }
 0x1e4   : > { %v760_v42 = vld [vmem:[#allocation2] sm:$0xf] }
 0x1e5   : > { %v761_v5 = vpack.c.bf16 %v760_v42, %v760_v42 }
 0x1e7   : > { %958 = vmatmul.mubr.msk.bf16.vlgmr.msra.gmra.mxu0 %vm762_vm3, %v761_v5 }
 0x2a7   : > { %v800_v60 = vpop.f32.mrf.mxu0 }
 0x2a8   : > { %v808_v43 = vpack.c.bf16 %v800_v60, %v800_v60 }
 0x2a9   : > { %v802_v45 = vpop.f32.mrf.mxu0 }
 0x2aa   : > { %v809_v47 = vpack.c.bf16 %v802_v45, %v802_v45  ;;  %v820_v48 = vsel %vm391_vm0, %v808_v43, 0 }
 0x2ab   : > { %v804_v0 = vpop.f32.mrf.mxu0 }
 0x2ac   : > { %959 = vmatprep.subr.msk.bf16.mxu1 %vm391_vm0, %v809_v47 }
 0x2ad   : > { %v805_v49 = vpop.f32.mrf.mxu0  ;;  %840 = vmatpush1.bf16.msra.mxu1 %v820_v48 }
 0x2b0   : > { %960 = vmatmul.mubr.msk.bf16.vlgmr.msra.gmra.mxu1 %vm384_vm1, %v807_v50 }
 0x370   : > { %v859_v54 = vpop.f32.mrf.mxu1 }
 0x371   : > { %v860_v56 = vadd.f32 %v859_v54, %v814_v53 }
 0x372   : > { %v861_v57 = vpop.f32.mrf.mxu1 }
 0x373   : > { %v866_v58 = vmax.f32 %v860_v56, 0.0  ;;  %v862_v61 = vadd.f32 %v861_v57, %v814_v53 }
 0x374   : > { %v863_v62 = vpop.f32.mrf.mxu1 }
 0x375   : > { %v867_v63 = vmax.f32 %v862_v61, 0.0  ;;  %v871_v4 = vadd.f32 %v866_v58, %v759_v55 }
 0x376   : > { %v864_v2 = vpop.f32.mrf.mxu1 }
 0x377   : > { %v872_v8 = vadd.f32 %v869_v1, %v867_v63 }
 0x379   : > { %v875_v9 = vcombine.low %v871_v4, %v872_v8 }
 0x37b   : > { %877 = vst [vmem:[%s332_s12] sm:$0xff] %v875_v9 }
 0x37c PF: > { %s19_s30 = sadd.s32 1, %s995_s30  }
 0x37d   : > { %p16_p4 = scmp.ge.s32.totalorder %s19_s30, 4  }
 0x37f   :  { %18 = sbr.rel (!%p16_p4) target bundleno = 1 (0x1), region = 86 }

</bundles_post_ra>
